<compile_context>
chip_gen: v7x
topology: tpu7x:2x2x1
jax: 0.10.0
libtpu: 0.0.40
codegen_flags: <defaults>
</compile_context>

<pallas_src>
import math

import jax
import jax.numpy as jnp
from jax.experimental import pallas as pl
from jax.experimental.pallas import tpu as pltpu

_TARGET_TILE_BYTES = 4 * 1024 * 1024   # ~4 MiB per x/out block
_VMEM_LIMIT_BYTES = 48 * 1024 * 1024   # explicit scoped-VMEM budget (<= v7x's 64 MiB)
_LANE = 128


def _round_up(n: int, m: int) -> int:
    return ((n + m - 1) // m) * m


def build_positional_encoding(d_model: int, max_len: int, dtype=jnp.float32) -> jnp.ndarray:
    """Deterministic sinusoidal PE, exactly as in the PyTorch __init__.

    Build it once at init, already at the model dtype/length, so the kernel
    wrapper never has to slice or cast it per call.
    """
    positions = jnp.arange(0, max_len, dtype=jnp.float32)[:, None]            # (L, 1)
    div_term = jnp.exp(
        jnp.arange(0, d_model, 2, dtype=jnp.float32) * (-math.log(10000.0) / d_model)
    )                                                                          # (D/2,)
    pe = jnp.zeros((max_len, d_model), dtype=jnp.float32)
    pe = pe.at[:, 0::2].set(jnp.sin(positions * div_term))
    pe = pe.at[:, 1::2].set(jnp.cos(positions * div_term))
    return pe[None, :, :].astype(dtype)                                        # (1, L, D)


# ----------------------------------------------------------------------------- kernels
def _add_pe_3d_kernel(x_ref, pe_ref, o_ref):
    # x/o: (TB, TL, D); pe: (1, TL, D) -> broadcast over the leading batch dim (VPU add).
    o_ref[...] = x_ref[...] + pe_ref[...]


def _add_pe_2d_kernel(x_ref, pe_ref, o_ref):
    # x/o: (TB, TD); pe: (1, TD) -> broadcast over sublane rows (VPU add).
    o_ref[...] = x_ref[...] + pe_ref[...]


# ----------------------------------------------------------------------------- tiling helpers
def _pick_seq_tile(L: int, pack: int, max_rows: int) -> int:
    """Largest legal sublane tile (multiple of `pack`, else 8, or all of L) <= max_rows."""
    if max_rows >= L:
        return L
    if max_rows >= pack:
        return (max_rows // pack) * pack
    if max_rows >= 8:
        return (max_rows // 8) * 8
    return min(L, 8)


def _add_pe_3d(x, pe, cparams):
    """D % 128 == 0 path: keep arrays 3D, tile (batch, seq) with PE resident over batch."""
    B, L, D = x.shape
    itemsize = jnp.dtype(x.dtype).itemsize
    pack = 8 * max(1, 4 // itemsize)          # sublane packing: 8 f32 / 16 bf16 / 32 int8
    row_bytes = D * itemsize
    total_bytes = B * L * row_bytes

    # Prefer keeping the full batch per block and splitting the sequence axis,
    # which carries the outer 'parallel' grid axis (v7x megacore split).
    max_rows_full_batch = _TARGET_TILE_BYTES // (B * row_bytes)
    if max_rows_full_batch >= min(L, pack):
        TB = B
        TL = _pick_seq_tile(L, pack, max_rows_full_batch)
    else:
        # Very large batch: smallest packed seq tile, split the batch (inner axis) instead.
        TL = min(L, pack)
        TB = min(B, max(1, _TARGET_TILE_BYTES // (TL * row_bytes)))

    # Megacore: guarantee >=2 blocks on the outer (seq) axis when there is enough work.
    if TL == L and total_bytes >= (1 << 20) and L >= 16:
        TL = min(L, _round_up(pl.cdiv(L, 2), 8))

    grid = (pl.cdiv(L, TL), pl.cdiv(B, TB))    # seq tiles outer ("parallel"), batch inner

    return pl.pallas_call(
        _add_pe_3d_kernel,
        out_shape=jax.ShapeDtypeStruct((B, L, D), x.dtype),
        grid=grid,
        in_specs=[
            pl.BlockSpec((TB, TL, D), lambda j, i: (i, j, 0)),   # x tile
            pl.BlockSpec((1, TL, D), lambda j, i: (0, j, 0)),    # PE: resident over batch axis
        ],
        out_specs=pl.BlockSpec((TB, TL, D), lambda j, i: (i, j, 0)),
        compiler_params=cparams,
    )(x, pe)


def _add_pe_2d(x, pe, cparams):
    """D < 128 path: flatten to (B, L*D), pad the row to a multiple of 128 (lane-dense)."""
    B, L, D = x.shape
    itemsize = jnp.dtype(x.dtype).itemsize
    pack = 8 * max(1, 4 // itemsize)          # sublane packing per dtype

    LD = L * D
    LDp = _round_up(LD, _LANE)
    x2 = x.reshape(B, LD)
    pe2 = pe.reshape(1, LD)
    if LDp != LD:
        # One extra (cheap, wrapper-side) pad pass; buys unmasked, lane-dense vst/vld.
        x2 = jnp.pad(x2, ((0, 0), (0, LDp - LD)))
        pe2 = jnp.pad(pe2, ((0, 0), (0, LDp - LD)))

    # Sublane (batch) tile: full batch when small, otherwise one dtype-packed group.
    TB = B if B <= pack else pack
    tb_vmem_rows = _round_up(TB, pack)         # rows actually allocated in VMEM per block
    pe_vmem_rows = pack                        # (1, TD) block pads to one packed group

    # Lane tile: multiple of 128, sized from the per-block budget, then capped so the
    # double-buffered working set 2*(x + out + pe) stays well inside the VMEM limit.
    max_td = max(_LANE, (_TARGET_TILE_BYTES // (tb_vmem_rows * itemsize)) // _LANE * _LANE)
    TD = min(LDp, max_td)
    while (2 * (2 * tb_vmem_rows + pe_vmem_rows) * TD * itemsize > _VMEM_LIMIT_BYTES // 2
           and TD > _LANE):
        TD = max(_LANE, (TD // 2) // _LANE * _LANE)

    # Megacore: prefer >=2 blocks along the outer (lane) axis when there is enough work.
    if TD == LDp and B * LDp * itemsize >= (1 << 20) and LDp >= 2 * _LANE:
        TD = min(LDp, _round_up(pl.cdiv(LDp, 2), _LANE))

    grid = (pl.cdiv(LDp, TD), pl.cdiv(B, TB))  # lane tiles outer ("parallel"), batch inner

    out2 = pl.pallas_call(
        _add_pe_2d_kernel,
        out_shape=jax.ShapeDtypeStruct((B, LDp), x.dtype),
        grid=grid,
        in_specs=[
            pl.BlockSpec((TB, TD), lambda j, i: (i, j)),         # x tile
            pl.BlockSpec((1, TD), lambda j, i: (0, j)),          # PE: resident over batch axis
        ],
        out_specs=pl.BlockSpec((TB, TD), lambda j, i: (i, j)),
        compiler_params=cparams,
    )(x2, pe2)

    if LDp != LD:
        out2 = out2[:, :LD]
    return out2.reshape(B, L, D)


# ----------------------------------------------------------------------------- public wrapper
def positional_embedding(x: jnp.ndarray, pe: jnp.ndarray) -> jnp.ndarray:
    """x: (B, L, D); pe: (1, P, D) with P >= L. Returns x + pe[:, :L] (module forward)."""
    B, L, D = x.shape
    assert pe.ndim == 3 and pe.shape[0] == 1 and pe.shape[2] == D and pe.shape[1] >= L
    # Only slice/cast when PE was not already built at the right length/dtype
    # (trace-time conditions -> no extra XLA ops for a properly initialized PE).
    if pe.shape[1] != L:
        pe = pe[:, :L, :]
    if pe.dtype != x.dtype:
        pe = pe.astype(x.dtype)

    cparams = pltpu.CompilerParams(
        dimension_semantics=("parallel", "arbitrary"),
        vmem_limit_bytes=_VMEM_LIMIT_BYTES,
    )

    if D % _LANE == 0:
        return _add_pe_3d(x, pe, cparams)
    # TODO(synk): for tiny batches with D < 128 the (B, L*D) layout still leaves
    # sublanes idle; a modulo-row (B*L, D) tiling could recover them.
    return _add_pe_2d(x, pe, cparams)


if __name__ == "__main__":
    key = jax.random.PRNGKey(0)

    # 1) Small shapes consistent with the module's forward (seq dim == max_len).
    batch, max_len, d_model = 2, 8, 32
    x = jax.random.normal(key, (batch, max_len, d_model), dtype=jnp.float32)
    pe = build_positional_encoding(d_model, max_len)
    out = jax.block_until_ready(positional_embedding(x, pe))
    assert out.shape == (batch, max_len, d_model)
    assert jnp.allclose(out, x + pe, atol=1e-6), "mismatch (small / flattened path)"

    # 2) Non-128-aligned L*D -> exercises the padded lane-dense fallback.
    b2, l2, d2 = 3, 5, 24
    x2 = jax.random.normal(jax.random.PRNGKey(1), (b2, l2, d2), dtype=jnp.float32)
    pe2 = build_positional_encoding(d2, l2)
    out2 = jax.block_until_ready(positional_embedding(x2, pe2))
    assert jnp.allclose(out2, x2 + pe2, atol=1e-6), "mismatch (padded fallback path)"

    # 3) bf16, D % 128 == 0 -> exercises the 3D path with dtype-aware packing.
    b3, l3, d3 = 2, 64, 128
    x3 = jax.random.normal(jax.random.PRNGKey(2), (b3, l3, d3), dtype=jnp.bfloat16)
    pe3 = build_positional_encoding(d3, l3, dtype=jnp.bfloat16)
    out3 = jax.block_until_ready(positional_embedding(x3, pe3))
    assert jnp.allclose(out3.astype(jnp.float32), (x3 + pe3).astype(jnp.float32),
                        atol=1e-2), "mismatch (bf16 3D path)"

    # 4) Larger f32, D % 128 == 0 -> multi-tile 3D path with resident PE (grid > 1).
    b4, l4, d4 = 8, 256, 256
    x4 = jax.random.normal(jax.random.PRNGKey(3), (b4, l4, d4), dtype=jnp.float32)
    pe4 = build_positional_encoding(d4, l4)
    out4 = jax.block_until_ready(positional_embedding(x4, pe4))
    assert jnp.allclose(out4, x4 + pe4, atol=1e-6), "mismatch (tiled 3D path)"

    print("KERNEL_OK")
</pallas_src>

<mosaic_0001>
module attributes {stable_mosaic.version = 11 : i64} {
  func.func @_add_pe_2d_kernel(%arg0: i32, %arg1: i32, %arg2: memref<2x256xf32, #tpu.memory_space<vmem>>, %arg3: memref<1x256xf32, #tpu.memory_space<vmem>>, %arg4: memref<2x256xf32, #tpu.memory_space<vmem>>) attributes {dimension_semantics = [#tpu.dimension_semantics<parallel>, #tpu.dimension_semantics<arbitrary>], iteration_bounds = array<i64: 1, 1>, scalar_prefetch = 0 : i64, scratch_operands = 0 : i64, tpu.core_type = #tpu.core_type<tc>, window_params = [{transform_indices = @transform_0, window_bounds = array<i64: 2, 256>}, {transform_indices = @transform_1, window_bounds = array<i64: 1, 256>}, {transform_indices = @transform_2, window_bounds = array<i64: 2, 256>}]} {
    %c0 = arith.constant 0 : index
    %c0_0 = arith.constant 0 : index
    %0 = vector.load %arg2[%c0, %c0_0] : memref<2x256xf32, #tpu.memory_space<vmem>>, vector<2x256xf32>
    %c0_1 = arith.constant 0 : index
    %c0_2 = arith.constant 0 : index
    %1 = vector.load %arg3[%c0_1, %c0_2] : memref<1x256xf32, #tpu.memory_space<vmem>>, vector<1x256xf32>
    %2 = vector.broadcast %1 : vector<1x256xf32> to vector<2x256xf32>
    %3 = arith.addf %0, %2 : vector<2x256xf32>
    %c0_3 = arith.constant 0 : index
    %c0_4 = arith.constant 0 : index
    %4 = vector.load %arg4[%c0_3, %c0_4] : memref<2x256xf32, #tpu.memory_space<vmem>>, vector<2x256xf32>
    tpu.vector_store %arg4[%c0_3, %c0_4], %3 {strides = array<i32>} : memref<2x256xf32, #tpu.memory_space<vmem>>, vector<2x256xf32>,
    return
  }
  func.func @transform_0(%arg0: i32, %arg1: i32) -> (i32, i32) {
    %c0_i32 = arith.constant 0 : i32
    return %arg1, %arg0 : i32, i32
  }
  func.func @transform_1(%arg0: i32, %arg1: i32) -> (i32, i32) {
    %c0_i32 = arith.constant 0 : i32
    %c0_i32_0 = arith.constant 0 : i32
    return %c0_i32, %arg0 : i32, i32
  }
  func.func @transform_2(%arg0: i32, %arg1: i32) -> (i32, i32) {
    %c0_i32 = arith.constant 0 : i32
    return %arg1, %arg0 : i32, i32
  }
}

</mosaic_0001>

<bundles_post_ra>
// kernel: tpu_custom_call.1
= control target key start
LH: loop header
LB: loop body
LE: loop exit
PB: predicated region body
PF: predicated region fallthrough
CT: control target
= control target key end

     0   :  { %7 = vsyncpa [#allocation3], 0  ;;  %s157_s0 = inlined_call_operand.hbm [shape: f32[2,256], index: 0, kind: input, shape index: {}]   ;;  %s158_s1 = inlined_call_operand.vmem [shape: f32[1,256], index: 1, kind: input, shape index: {}]   ;;  %s159_s2 = inlined_call_operand.hbm [shape: f32[2,256], index: 2, kind: output, shape index: {}]  }
   0x1   :  { %8 = vsyncpa [#allocation4], 0  ;;  %s112_s9 = smov [#allocation2]   ;;  %s64_s13 = scalar_lea.hbm %s157_s0, 64 }
   0x2   :  { %s15_s10 = sshll.u32 %s112_s9, 4  ;;  %p65_p0 = scmp.ne.s32.totalorder %s157_s0, %s64_s13  ;;  %s16_s10 = int_to_ptr.vmem [resolvable:$true] %s15_s10 }
   0x3   :  { %p68_p1 = scmp.lt.u32.totalorder %s64_s13, %s157_s0 }
   0x5   :  { %p70_p2 = pnand %p68_p1, %p65_p0 }
   0x7   :  { %73 = shalt.err (!%p70_p2)
}
   0x8   :  { %s74_s18 = scalar_lea.vmem %s16_s10, 64  ;;  %p79_p4 = scmp.lt.s32.totalorder %s16_s10, %s16_s10 }
   0x9   :  { %p75_p3 = scmp.ne.s32.totalorder %s16_s10, %s74_s18  ;;  %p80_p5 = scmp.lt.s32.totalorder %s74_s18, %s74_s18 }
   0xb   :  { %p81_p6 = por %p80_p5, %p79_p4 }
   0xd   :  { %p82_p7 = pnand %p81_p6, %p75_p3 }
   0xf   :  { %85 = shalt.err (!%p82_p7)
}
  0x10   :  { %18 = dma.hbm_to_vmem [thread:$0]  %s157_s0, 64, %s16_s10, [#allocation3]  }
  0x11   :  { %108 = dma.done.wait [#allocation3], 64  }
  0x12   :  { %109 = vsyncadd [#allocation3], 4294967232  ;;  %v27_v0 = vlaneseq  ;;  %v113_v1 = vmov 1983009808   ;;  %v25_v7 = vld [vmem:[%s158_s1] sm:$0x3] }
  0x13   :  { %v37_v2 = vunpack.c.l.s4 %v113_v1  ;;  %v24_v12 = vld [vmem:[#allocation2] sm:$0xf]  ;;  %s114_s23 = smov [#allocation5]  }
  0x14   :  { %v28_v3 = vshrl.u32 %v27_v0, 7  ;;  %s52_s0 = sshll.u32 %s114_s23, 4  ;;  %s53_s0 = int_to_ptr.vmem [resolvable:$true] %s52_s0 }
  0x15   :  { %v38_v6 = vunpack.c.0.s8 %v37_v2  ;;  %s86_s24 = scalar_lea.vmem %s53_s0, 64  ;;  %p91_p9 = scmp.lt.s32.totalorder %s53_s0, %s53_s0 }
  0x16   :  { %v29_v4 = vsub.s32 0, %v28_v3  ;;  %v33_v5 = vsub.s32 1, %v28_v3  ;;  %p87_p8 = scmp.ne.s32.totalorder %s53_s0, %s86_s24  ;;  %p92_p10 = scmp.lt.s32.totalorder %s86_s24, %s86_s24 }
  0x17   :  { %v41_v10 = vsub.s32 %v38_v6, %v28_v3 }
  0x18   :  { %v30_v8 = vrot.slane %v25_v7, %v29_v4  ;;  %v34_v9 = vrot.slane %v25_v7, %v33_v5  ;;  %p93_p11 = por %p92_p10, %p91_p9 }
  0x1a   :  { %v35_v11 = vcombine.low %v30_v8, %v34_v9  ;;  %p94_p12 = pnand %p93_p11, %p87_p8 }
  0x1c   :  { %v42_v13 = vrot.slane %v35_v11, %v41_v10 }
  0x1e   :  { %v44_v14 = vadd.f32 %v42_v13, %v24_v12 }
  0x20   :  { %45 = vst [vmem:[#allocation5] sm:$0xf] %v44_v14 }
  0x21   :  { %97 = shalt.err (!%p94_p12)
}
  0x22   :  { %s98_s26 = scalar_lea.hbm %s159_s2, 64 }
  0x23   :  { %p99_p13 = scmp.ne.s32.totalorder %s159_s2, %s98_s26  ;;  %p102_p0 = scmp.lt.u32.totalorder %s98_s26, %s159_s2 }
  0x25   :  { %p104_p1 = pnand %p102_p0, %p99_p13 }
  0x27   :  { %107 = shalt.err (!%p104_p1)
}
  0x28   :  { %55 = dma.vmem_to_hbm [thread:$0]  %s53_s0, 64, %s159_s2, [#allocation4]  }
  0x29   :  { %110 = dma.done.wait [#allocation4], 64  }
  0x2a   :  { %111 = vsyncadd [#allocation4], 4294967232 }
  0x2b   :  { %59 = vsyncpa [#allocation3], 1 }
  0x2c   :  { %60 = vsyncpa [#allocation4], 1 }

</bundles_post_ra>
